<compile_context>
chip_gen: v5e
topology: v5e:2x2
jax: 0.10.0
libtpu: 0.0.40
codegen_flags: <defaults>
</compile_context>

<pallas_src>
import jax
import jax.numpy as jnp
from jax.experimental import pallas as pl
from jax.experimental.pallas import tpu as pltpu


def _round_up(x, m):
    return ((x + m - 1) // m) * m


def _normalize_kernel(x_ref, scale_ref, bias_ref, o_ref):
    # x_ref:     (TR, TC)  pixel tile
    # scale_ref: (TR, 1)   per-row 1/std      (f32)
    # bias_ref:  (TR, 1)   per-row -mean/std  (f32)
    x = x_ref[...].astype(jnp.float32)
    s = scale_ref[...]
    b = bias_ref[...]
    o_ref[...] = (x * s + b).astype(o_ref.dtype)


def normalize(img, mean, std):
    """img: (N, C, H, W); mean, std: (C,).

    Returns (img - mean[:, None, None]) / std[:, None, None] with the same
    dtype as img (internally computed in f32).
    """
    N, C, H, W = img.shape
    rows = N * C
    cols = H * W

    x2d = img.reshape(rows, cols)

    # Precompute per-channel scale/bias in f32 (glue, not hot path), then
    # broadcast to per-row columns of shape (rows, 1).
    mean32 = mean.astype(jnp.float32)
    std32 = std.astype(jnp.float32)
    scale = 1.0 / std32
    bias = -mean32 * scale
    scale_rows = jnp.tile(scale, (N,)).reshape(rows, 1)
    bias_rows = jnp.tile(bias, (N,)).reshape(rows, 1)

    # Tile sizes: lane-dense columns (multiple of 128), sublane-aligned rows
    # (multiple of 8). Edge blocks (if rows/cols are not exact multiples) are
    # masked automatically by Pallas.
    TR = min(256, _round_up(rows, 8))
    TC = min(2048, _round_up(cols, 128))
    grid = (pl.cdiv(rows, TR), pl.cdiv(cols, TC))

    out2d = pl.pallas_call(
        _normalize_kernel,
        out_shape=jax.ShapeDtypeStruct((rows, cols), img.dtype),
        grid_spec=pl.GridSpec(
            grid=grid,
            in_specs=[
                pl.BlockSpec((TR, TC), lambda i, j: (i, j)),
                pl.BlockSpec((TR, 1), lambda i, j: (i, 0)),
                pl.BlockSpec((TR, 1), lambda i, j: (i, 0)),
            ],
            out_specs=pl.BlockSpec((TR, TC), lambda i, j: (i, j)),
        ),
        compiler_params=pltpu.CompilerParams(
            # Both axes are independent (no reduction): shardable across
            # TensorCores on v7x, neutral on single-TC v5e/v6e.
            dimension_semantics=("parallel", "parallel"),
            # ~2 MiB blocks x (in + out) x double buffering + tiny stats
            # blocks fits easily; 32 MiB is safe on every generation
            # (v7x: 64 MiB physical, v5e/v6e: 128 MiB physical).
            vmem_limit_bytes=32 * 1024 * 1024,
        ),
    )(x2d, scale_rows, bias_rows)

    return out2d.reshape(N, C, H, W)


if __name__ == "__main__":
    key = jax.random.PRNGKey(0)
    k_img, k_mean, k_std = jax.random.split(key, 3)

    N, C, H, W = 2, 4, 16, 16
    img = jax.random.normal(k_img, (N, C, H, W), dtype=jnp.float32)
    # Deterministic "parameters" (the module takes mean/std at construction).
    mean = jax.random.normal(k_mean, (C,), dtype=jnp.float32) * 0.5
    std = jax.random.uniform(k_std, (C,), dtype=jnp.float32) * 0.5 + 0.5  # strictly positive

    out = normalize(img, mean, std)
    jax.block_until_ready(out)

    # Reference check against pure-JAX semantics of the PyTorch forward.
    # (Multiply-by-reciprocal vs true divide -> allow a few ulps.)
    ref = (img - mean.reshape(-1, 1, 1)) / std.reshape(-1, 1, 1)
    assert jnp.allclose(out, ref, atol=1e-5, rtol=1e-5), "mismatch vs reference"

    print("KERNEL_OK")
</pallas_src>

<mosaic_0001>
module attributes {stable_mosaic.version = 11 : i64} {
  func.func @_normalize_kernel(%arg0: i32, %arg1: i32, %arg2: memref<8x256xf32, #tpu.memory_space<vmem>>, %arg3: memref<8x1xf32, #tpu.memory_space<vmem>>, %arg4: memref<8x1xf32, #tpu.memory_space<vmem>>, %arg5: memref<8x256xf32, #tpu.memory_space<vmem>>) attributes {dimension_semantics = [#tpu.dimension_semantics<parallel>, #tpu.dimension_semantics<parallel>], iteration_bounds = array<i64: 1, 1>, scalar_prefetch = 0 : i64, scratch_operands = 0 : i64, tpu.core_type = #tpu.core_type<tc>, window_params = [{transform_indices = @transform_0, window_bounds = array<i64: 8, 256>}, {transform_indices = @transform_1, window_bounds = array<i64: 8, 1>}, {transform_indices = @transform_2, window_bounds = array<i64: 8, 1>}, {transform_indices = @transform_3, window_bounds = array<i64: 8, 256>}]} {
    %c0 = arith.constant 0 : index
    %c0_0 = arith.constant 0 : index
    %0 = vector.load %arg2[%c0, %c0_0] : memref<8x256xf32, #tpu.memory_space<vmem>>, vector<8x256xf32>
    %c0_1 = arith.constant 0 : index
    %c0_2 = arith.constant 0 : index
    %1 = vector.load %arg3[%c0_1, %c0_2] : memref<8x1xf32, #tpu.memory_space<vmem>>, vector<8x1xf32>
    %c0_3 = arith.constant 0 : index
    %c0_4 = arith.constant 0 : index
    %2 = vector.load %arg4[%c0_3, %c0_4] : memref<8x1xf32, #tpu.memory_space<vmem>>, vector<8x1xf32>
    %3 = vector.broadcast %1 : vector<8x1xf32> to vector<8x256xf32>
    %4 = arith.mulf %0, %3 : vector<8x256xf32>
    %5 = vector.broadcast %2 : vector<8x1xf32> to vector<8x256xf32>
    %6 = arith.addf %4, %5 : vector<8x256xf32>
    %c0_5 = arith.constant 0 : index
    %c0_6 = arith.constant 0 : index
    %7 = vector.load %arg5[%c0_5, %c0_6] : memref<8x256xf32, #tpu.memory_space<vmem>>, vector<8x256xf32>
    tpu.vector_store %arg5[%c0_5, %c0_6], %6 {strides = array<i32>} : memref<8x256xf32, #tpu.memory_space<vmem>>, vector<8x256xf32>,
    return
  }
  func.func @transform_0(%arg0: i32, %arg1: i32) -> (i32, i32) {
    %c0_i32 = arith.constant 0 : i32
    return %arg0, %arg1 : i32, i32
  }
  func.func @transform_1(%arg0: i32, %arg1: i32) -> (i32, i32) {
    %c0_i32 = arith.constant 0 : i32
    %c0_i32_0 = arith.constant 0 : i32
    return %arg0, %c0_i32 : i32, i32
  }
  func.func @transform_2(%arg0: i32, %arg1: i32) -> (i32, i32) {
    %c0_i32 = arith.constant 0 : i32
    %c0_i32_0 = arith.constant 0 : i32
    return %arg0, %c0_i32 : i32, i32
  }
  func.func @transform_3(%arg0: i32, %arg1: i32) -> (i32, i32) {
    %c0_i32 = arith.constant 0 : i32
    return %arg0, %arg1 : i32, i32
  }
}

</mosaic_0001>

<bundles_post_ra>
// kernel: tpu_custom_call.1
= control target key start
LH: loop header
LB: loop body
LE: loop exit
PB: predicated region body
PF: predicated region fallthrough
CT: control target
= control target key end

     0   :  { %s117_s0 = inlined_call_operand.vmem [shape: f32[8,256], index: 0, kind: input, shape index: {}]   ;;  %s118_s1 = inlined_call_operand.vmem [shape: f32[8,1], index: 1, kind: input, shape index: {}]   ;;  %s119_s2 = inlined_call_operand.vmem [shape: f32[8,1], index: 2, kind: input, shape index: {}]   ;;  %s120_s3 = inlined_call_operand.hbm [shape: f32[8,256], index: 3, kind: output, shape index: {}]  }
   0x1   :  { %v17_v0 = vld [vmem:[%s118_s1] sm:$0xff] }
   0x2   :  { %8 = vsyncpa [#allocation3], 0  ;;  %v80_v1 = vmov 0   ;;  %v18_v2 = vld [vmem:[%s119_s2] sm:$0xff]  ;;  %v16_v5 = vld [vmem:[%s117_s0 + $0x8] sm:$0xff]  ;;  %s81_s1 = smov [#allocation2]  }
   0x3   :  { %53 = vset.pattern.permute.xlu0 %v80_v1  ;;  %v15_v4 = vld [vmem:[%s117_s0] sm:$0xff]  ;;  %s40_s20 = sshll.u32 %s81_s1, 4  ;;  %s42_s23 = sshll.u32 %s120_s3, 4  ;;  %s41_s20 = int_to_ptr.vmem [resolvable:$true] %s40_s20  ;;  %s43_s23 = int_to_ptr.hbm [resolvable:$true] %s42_s23 }
   0x4   :  { %21 = vperm.xlu0 %53, %v17_v0  }
   0xc   :  { %28 = vperm.xlu0 %53, %v18_v2  }
  0x76   :  { %v22_v3 = vpop.permute.xlu0 %21 }
  0x77   :  { %v24_v6 = vmul.f32 %v22_v3, %v15_v4  ;;  %v25_v7 = vmul.f32 %v22_v3, %v16_v5 }
  0x7e   :  { %v29_v8 = vpop.permute.xlu0 %28 }
  0x7f   :  { %v31_v9 = vadd.f32 %v29_v8, %v24_v6  ;;  %v32_v10 = vadd.f32 %v29_v8, %v25_v7 }
  0x81   :  { %33 = vst [vmem:[#allocation2] sm:$0xff] %v31_v9 }
  0x82   :  { %34 = vst [vmem:[#allocation2 + $0x8] sm:$0xff] %v32_v10 }
  0x83   :  { %45 = dma.vmem_to_hbm [thread:$0]  %s41_s20, 256, %s43_s23, [#allocation3]  }
  0x84   :  { %78 = dma.done.wait [#allocation3], 256  }
  0x85   :  { %79 = vsyncadd [#allocation3], 4294967040 }
  0x86   :  { %50 = vsyncpa [#allocation3], 1 }

</bundles_post_ra>
